<compile_context>
chip_gen: v6e
topology: v6e:2x2x1
jax: 0.10.0
libtpu: 0.0.40
codegen_flags: <defaults>
</compile_context>

<pallas_src>
import functools

import jax
import jax.numpy as jnp
from jax.experimental import pallas as pl
from jax.experimental.pallas import tpu as pltpu


def _leaky_relu(x, slope=0.1):
    return jnp.where(x > 0, x, slope * x)


# --------------------------------------------------------------------------
# Kernel: 4 matmuls + bias + LeakyReLU, one batch tile per grid step.
# --------------------------------------------------------------------------
def mlp_kernel(
    x_ref,
    w1_ref, t1_ref,
    w2_ref, t2_ref,
    w3_ref, t3_ref,
    w4_ref, b4_ref,
    out_ref,
):
    # layer 1: (folded) Linear+BN -> LeakyReLU -> Dropout(identity)
    h = jnp.dot(x_ref[...].astype(jnp.bfloat16), w1_ref[...],
                preferred_element_type=jnp.float32)
    h = _leaky_relu(h + t1_ref[...])

    # layer 2
    h = jnp.dot(h.astype(jnp.bfloat16), w2_ref[...],
                preferred_element_type=jnp.float32)
    h = _leaky_relu(h + t2_ref[...])

    # layer 3
    h = jnp.dot(h.astype(jnp.bfloat16), w3_ref[...],
                preferred_element_type=jnp.float32)
    h = _leaky_relu(h + t3_ref[...])

    # layer 4: plain Linear head
    out = jnp.dot(h.astype(jnp.bfloat16), w4_ref[...],
                  preferred_element_type=jnp.float32)
    out_ref[...] = (out + b4_ref[...]).astype(out_ref.dtype)


# --------------------------------------------------------------------------
# Wrapper: batch-tiled pallas_call, weights resident in VMEM.
# --------------------------------------------------------------------------
def book_recommendation_forward(x, params, *, tb=None):
    """x: (B, input_dim) float32.  params: dict of folded parameters."""
    B, input_dim = x.shape
    hidden_dim = params["w1"].shape[1]
    num_books = params["w4"].shape[1]

    # Batch tile: multiple of 8 (sublane), capped so large batches pipeline.
    if tb is None:
        tb = 256 if B >= 256 else max(8, ((B + 7) // 8) * 8)
    b_pad = ((B + tb - 1) // tb) * tb
    if b_pad != B:
        x = jnp.pad(x, ((0, b_pad - B), (0, 0)))
    num_tiles = b_pad // tb

    operands = (
        x,
        params["w1"], params["t1"],
        params["w2"], params["t2"],
        params["w3"], params["t3"],
        params["w4"], params["b4"],
    )

    def resident_spec(a):
        # whole array as one block, same block every grid step -> stays in VMEM
        return pl.BlockSpec(a.shape, lambda i: tuple(0 for _ in a.shape))

    in_specs = [pl.BlockSpec((tb, input_dim), lambda i: (i, 0))]
    in_specs += [resident_spec(a) for a in operands[1:]]
    out_spec = pl.BlockSpec((tb, num_books), lambda i: (i, 0))

    # Size the VMEM budget from the real footprint (double-buffering + slack),
    # instead of requesting 64 MiB (the whole physical VMEM on v7x).
    param_bytes = sum(int(a.size) * jnp.dtype(a.dtype).itemsize
                      for a in operands[1:])
    io_tile_bytes = tb * input_dim * 4 + tb * num_books * 4
    act_bytes = tb * hidden_dim * 4 * 3
    vmem_limit = 2 * (param_bytes + io_tile_bytes) + act_bytes + (2 << 20)
    vmem_limit = int(min(max(vmem_limit, 4 << 20), 48 << 20))

    out = pl.pallas_call(
        mlp_kernel,
        out_shape=jax.ShapeDtypeStruct((b_pad, num_books), jnp.float32),
        grid=(num_tiles,),
        in_specs=in_specs,
        out_specs=out_spec,
        compiler_params=pltpu.CompilerParams(
            dimension_semantics=("parallel",),
            vmem_limit_bytes=vmem_limit,
        ),
    )(*operands)

    return out[:B]


# --------------------------------------------------------------------------
# Parameter construction (synthetic, deterministic) + BN folding.
# --------------------------------------------------------------------------
def make_raw_params(key, input_dim, hidden_dim, num_books):
    """PyTorch-style params: Linear (w as (in,out), b) + BN (gamma,beta,mean,var)."""
    ks = jax.random.split(key, 20)
    k = iter(ks)

    def linear(fan_in, fan_out):
        w = jax.random.normal(next(k), (fan_in, fan_out), jnp.float32) / jnp.sqrt(fan_in)
        b = 0.01 * jax.random.normal(next(k), (fan_out,), jnp.float32)
        return w, b

    def bn(dim):
        gamma = 1.0 + 0.1 * jax.random.normal(next(k), (dim,), jnp.float32)
        beta = 0.1 * jax.random.normal(next(k), (dim,), jnp.float32)
        mean = 0.1 * jax.random.normal(next(k), (dim,), jnp.float32)
        var = jnp.abs(jax.random.normal(next(k), (dim,), jnp.float32)) + 0.5
        return gamma, beta, mean, var

    h2 = hidden_dim // 2
    w1, b1 = linear(input_dim, hidden_dim)
    bn1 = bn(hidden_dim)
    w2, b2 = linear(hidden_dim, hidden_dim)
    bn2 = bn(hidden_dim)
    w3, b3 = linear(hidden_dim, h2)
    bn3 = bn(h2)
    w4, b4 = linear(h2, num_books)

    return dict(
        layers=[(w1, b1, *bn1), (w2, b2, *bn2), (w3, b3, *bn3)],
        w4=w4, b4=b4,
    )


def fold_params(raw, eps=1e-5):
    """Fold BN into the weights (scale) and a bias (shift); cast weights to bf16."""
    folded = {}
    for idx, (w, b, gamma, beta, mean, var) in enumerate(raw["layers"], start=1):
        s = gamma / jnp.sqrt(var + eps)            # per-output-feature scale
        w_f = (w * s[None, :]).astype(jnp.bfloat16)  # fold scale into weights
        t = ((b - mean) * s + beta).reshape(1, -1).astype(jnp.float32)
        folded[f"w{idx}"] = w_f
        folded[f"t{idx}"] = t
    folded["w4"] = raw["w4"].astype(jnp.bfloat16)
    folded["b4"] = raw["b4"].reshape(1, -1).astype(jnp.float32)
    return folded


# --------------------------------------------------------------------------
# References.
# --------------------------------------------------------------------------
def reference_forward_f32(x, raw, eps=1e-5):
    """Exact eval-mode semantics of the PyTorch module, full f32."""
    h = x
    for (w, b, gamma, beta, mean, var) in raw["layers"]:
        h = h @ w + b
        h = (h - mean) / jnp.sqrt(var + eps) * gamma + beta
        h = _leaky_relu(h)
    return h @ raw["w4"] + raw["b4"]


def reference_forward_folded(x, p):
    """Same math as the kernel (folded params, bf16 matmul inputs)."""
    h = jnp.dot(x.astype(jnp.bfloat16), p["w1"], preferred_element_type=jnp.float32)
    h = _leaky_relu(h + p["t1"])
    h = jnp.dot(h.astype(jnp.bfloat16), p["w2"], preferred_element_type=jnp.float32)
    h = _leaky_relu(h + p["t2"])
    h = jnp.dot(h.astype(jnp.bfloat16), p["w3"], preferred_element_type=jnp.float32)
    h = _leaky_relu(h + p["t3"])
    out = jnp.dot(h.astype(jnp.bfloat16), p["w4"], preferred_element_type=jnp.float32)
    return out + p["b4"]


if __name__ == "__main__":
    # Small shapes consistent with the module (input_dim=32, hidden_dim=256,
    # num_books=512, batch=8).
    B, INPUT_DIM, HIDDEN_DIM, NUM_BOOKS = 8, 32, 256, 512

    key = jax.random.PRNGKey(0)
    kx, kp = jax.random.split(key)
    x = jax.random.normal(kx, (B, INPUT_DIM), jnp.float32)

    raw = make_raw_params(kp, INPUT_DIM, HIDDEN_DIM, NUM_BOOKS)
    params = fold_params(raw)

    out = book_recommendation_forward(x, params)
    out = jax.block_until_ready(out)
    assert out.shape == (B, NUM_BOOKS)

    # Tight check vs a plain-JAX version of the same folded/bf16 math.
    ref_folded = reference_forward_folded(x, params)
    assert jnp.allclose(out, ref_folded, atol=2e-2, rtol=2e-2), \
        "mismatch vs folded bf16 JAX reference"

    # Loose check vs exact f32 eval-mode module semantics (bf16 weight quant).
    ref_f32 = reference_forward_f32(x, raw)
    assert jnp.allclose(out, ref_f32, atol=5e-2, rtol=5e-2), \
        "mismatch vs f32 eval-mode reference"

    print("KERNEL_OK")
</pallas_src>

<mosaic_0001>
module attributes {stable_mosaic.version = 11 : i64} {
  func.func @mlp_kernel(%arg0: i32, %arg1: memref<8x32xf32, #tpu.memory_space<vmem>>, %arg2: memref<32x256xbf16, #tpu.memory_space<vmem>>, %arg3: memref<1x256xf32, #tpu.memory_space<vmem>>, %arg4: memref<256x256xbf16, #tpu.memory_space<vmem>>, %arg5: memref<1x256xf32, #tpu.memory_space<vmem>>, %arg6: memref<256x128xbf16, #tpu.memory_space<vmem>>, %arg7: memref<1x128xf32, #tpu.memory_space<vmem>>, %arg8: memref<128x512xbf16, #tpu.memory_space<vmem>>, %arg9: memref<1x512xf32, #tpu.memory_space<vmem>>, %arg10: memref<8x512xf32, #tpu.memory_space<vmem>>) attributes {dimension_semantics = [#tpu.dimension_semantics<parallel>], iteration_bounds = array<i64: 1>, scalar_prefetch = 0 : i64, scratch_operands = 0 : i64, tpu.core_type = #tpu.core_type<tc>, window_params = [{transform_indices = @transform_0, window_bounds = array<i64: 8, 32>}, {pipeline_mode = #tpu.pipeline_mode<synchronous>, transform_indices = @transform_1, window_bounds = array<i64: 32, 256>}, {pipeline_mode = #tpu.pipeline_mode<synchronous>, transform_indices = @transform_2, window_bounds = array<i64: 1, 256>}, {pipeline_mode = #tpu.pipeline_mode<synchronous>, transform_indices = @transform_3, window_bounds = array<i64: 256, 256>}, {pipeline_mode = #tpu.pipeline_mode<synchronous>, transform_indices = @transform_4, window_bounds = array<i64: 1, 256>}, {pipeline_mode = #tpu.pipeline_mode<synchronous>, transform_indices = @transform_5, window_bounds = array<i64: 256, 128>}, {pipeline_mode = #tpu.pipeline_mode<synchronous>, transform_indices = @transform_6, window_bounds = array<i64: 1, 128>}, {pipeline_mode = #tpu.pipeline_mode<synchronous>, transform_indices = @transform_7, window_bounds = array<i64: 128, 512>}, {pipeline_mode = #tpu.pipeline_mode<synchronous>, transform_indices = @transform_8, window_bounds = array<i64: 1, 512>}, {transform_indices = @transform_9, window_bounds = array<i64: 8, 512>}]} {
    %c0 = arith.constant 0 : index
    %c0_0 = arith.constant 0 : index
    %0 = vector.load %arg1[%c0, %c0_0] : memref<8x32xf32, #tpu.memory_space<vmem>>, vector<8x32xf32>
    %1 = arith.truncf %0 : vector<8x32xf32> to vector<8x32xbf16>
    %c0_1 = arith.constant 0 : index
    %c0_2 = arith.constant 0 : index
    %2 = vector.load %arg2[%c0_1, %c0_2] : memref<32x256xbf16, #tpu.memory_space<vmem>>, vector<32x256xbf16>
    %cst = arith.constant dense<0.000000e+00> : vector<8x256xf32>
    %3 = tpu.matmul %1, %2, %cst {dimension_numbers = #tpu.dot_dimension_numbers<[1], [0], [0], [1], [0, 0, 1, 1], [], []>} : vector<8x32xbf16>, vector<32x256xbf16>, vector<8x256xf32> -> vector<8x256xf32>
    %c0_3 = arith.constant 0 : index
    %c0_4 = arith.constant 0 : index
    %4 = vector.load %arg3[%c0_3, %c0_4] : memref<1x256xf32, #tpu.memory_space<vmem>>, vector<1x256xf32>
    %5 = vector.broadcast %4 : vector<1x256xf32> to vector<8x256xf32>
    %6 = arith.addf %3, %5 : vector<8x256xf32>
    %cst_5 = arith.constant 0.000000e+00 : f32
    %7 = vector.broadcast %cst_5 : f32 to vector<8x256xf32>
    %8 = arith.cmpf ogt, %6, %7 : vector<8x256xf32>
    %cst_6 = arith.constant 1.000000e-01 : f32
    %9 = vector.broadcast %cst_6 : f32 to vector<8x256xf32>
    %10 = arith.mulf %9, %6 : vector<8x256xf32>
    %11 = arith.select %8, %6, %10 : vector<8x256xi1>, vector<8x256xf32>
    %12 = arith.truncf %11 : vector<8x256xf32> to vector<8x256xbf16>
    %c0_7 = arith.constant 0 : index
    %c0_8 = arith.constant 0 : index
    %13 = vector.load %arg4[%c0_7, %c0_8] : memref<256x256xbf16, #tpu.memory_space<vmem>>, vector<256x256xbf16>
    %cst_9 = arith.constant dense<0.000000e+00> : vector<8x256xf32>
    %14 = tpu.matmul %12, %13, %cst_9 {dimension_numbers = #tpu.dot_dimension_numbers<[1], [0], [0], [1], [0, 0, 1, 1], [], []>} : vector<8x256xbf16>, vector<256x256xbf16>, vector<8x256xf32> -> vector<8x256xf32>
    %c0_10 = arith.constant 0 : index
    %c0_11 = arith.constant 0 : index
    %15 = vector.load %arg5[%c0_10, %c0_11] : memref<1x256xf32, #tpu.memory_space<vmem>>, vector<1x256xf32>
    %16 = vector.broadcast %15 : vector<1x256xf32> to vector<8x256xf32>
    %17 = arith.addf %14, %16 : vector<8x256xf32>
    %cst_12 = arith.constant 0.000000e+00 : f32
    %18 = vector.broadcast %cst_12 : f32 to vector<8x256xf32>
    %19 = arith.cmpf ogt, %17, %18 : vector<8x256xf32>
    %cst_13 = arith.constant 1.000000e-01 : f32
    %20 = vector.broadcast %cst_13 : f32 to vector<8x256xf32>
    %21 = arith.mulf %20, %17 : vector<8x256xf32>
    %22 = arith.select %19, %17, %21 : vector<8x256xi1>, vector<8x256xf32>
    %23 = arith.truncf %22 : vector<8x256xf32> to vector<8x256xbf16>
    %c0_14 = arith.constant 0 : index
    %c0_15 = arith.constant 0 : index
    %24 = vector.load %arg6[%c0_14, %c0_15] : memref<256x128xbf16, #tpu.memory_space<vmem>>, vector<256x128xbf16>
    %cst_16 = arith.constant dense<0.000000e+00> : vector<8x128xf32>
    %25 = tpu.matmul %23, %24, %cst_16 {dimension_numbers = #tpu.dot_dimension_numbers<[1], [0], [0], [1], [0, 0, 1, 1], [], []>} : vector<8x256xbf16>, vector<256x128xbf16>, vector<8x128xf32> -> vector<8x128xf32>
    %c0_17 = arith.constant 0 : index
    %c0_18 = arith.constant 0 : index
    %26 = vector.load %arg7[%c0_17, %c0_18] : memref<1x128xf32, #tpu.memory_space<vmem>>, vector<1x128xf32>
    %27 = vector.broadcast %26 : vector<1x128xf32> to vector<8x128xf32>
    %28 = arith.addf %25, %27 : vector<8x128xf32>
    %cst_19 = arith.constant 0.000000e+00 : f32
    %29 = vector.broadcast %cst_19 : f32 to vector<8x128xf32>
    %30 = arith.cmpf ogt, %28, %29 : vector<8x128xf32>
    %cst_20 = arith.constant 1.000000e-01 : f32
    %31 = vector.broadcast %cst_20 : f32 to vector<8x128xf32>
    %32 = arith.mulf %31, %28 : vector<8x128xf32>
    %33 = arith.select %30, %28, %32 : vector<8x128xi1>, vector<8x128xf32>
    %34 = arith.truncf %33 : vector<8x128xf32> to vector<8x128xbf16>
    %c0_21 = arith.constant 0 : index
    %c0_22 = arith.constant 0 : index
    %35 = vector.load %arg8[%c0_21, %c0_22] : memref<128x512xbf16, #tpu.memory_space<vmem>>, vector<128x512xbf16>
    %cst_23 = arith.constant dense<0.000000e+00> : vector<8x512xf32>
    %36 = tpu.matmul %34, %35, %cst_23 {dimension_numbers = #tpu.dot_dimension_numbers<[1], [0], [0], [1], [0, 0, 1, 1], [], []>} : vector<8x128xbf16>, vector<128x512xbf16>, vector<8x512xf32> -> vector<8x512xf32>
    %c0_24 = arith.constant 0 : index
    %c0_25 = arith.constant 0 : index
    %37 = vector.load %arg9[%c0_24, %c0_25] : memref<1x512xf32, #tpu.memory_space<vmem>>, vector<1x512xf32>
    %38 = vector.broadcast %37 : vector<1x512xf32> to vector<8x512xf32>
    %39 = arith.addf %36, %38 : vector<8x512xf32>
    %c0_26 = arith.constant 0 : index
    %c0_27 = arith.constant 0 : index
    %40 = vector.load %arg10[%c0_26, %c0_27] : memref<8x512xf32, #tpu.memory_space<vmem>>, vector<8x512xf32>
    tpu.vector_store %arg10[%c0_26, %c0_27], %39 {strides = array<i32>} : memref<8x512xf32, #tpu.memory_space<vmem>>, vector<8x512xf32>,
    return
  }
  func.func @transform_0(%arg0: i32) -> (i32, i32) {
    %c0_i32 = arith.constant 0 : i32
    %c0_i32_0 = arith.constant 0 : i32
    return %arg0, %c0_i32 : i32, i32
  }
  func.func @transform_1(%arg0: i32) -> (i32, i32) {
    %c0_i32 = arith.constant 0 : i32
    %c0_i32_0 = arith.constant 0 : i32
    %c0_i32_1 = arith.constant 0 : i32
    return %c0_i32, %c0_i32_0 : i32, i32
  }
  func.func @transform_2(%arg0: i32) -> (i32, i32) {
    %c0_i32 = arith.constant 0 : i32
    %c0_i32_0 = arith.constant 0 : i32
    %c0_i32_1 = arith.constant 0 : i32
    return %c0_i32, %c0_i32_0 : i32, i32
  }
  func.func @transform_3(%arg0: i32) -> (i32, i32) {
    %c0_i32 = arith.constant 0 : i32
    %c0_i32_0 = arith.constant 0 : i32
    %c0_i32_1 = arith.constant 0 : i32
    return %c0_i32, %c0_i32_0 : i32, i32
  }
  func.func @transform_4(%arg0: i32) -> (i32, i32) {
    %c0_i32 = arith.constant 0 : i32
    %c0_i32_0 = arith.constant 0 : i32
    %c0_i32_1 = arith.constant 0 : i32
    return %c0_i32, %c0_i32_0 : i32, i32
  }
  func.func @transform_5(%arg0: i32) -> (i32, i32) {
    %c0_i32 = arith.constant 0 : i32
    %c0_i32_0 = arith.constant 0 : i32
    %c0_i32_1 = arith.constant 0 : i32
    return %c0_i32, %c0_i32_0 : i32, i32
  }
  func.func @transform_6(%arg0: i32) -> (i32, i32) {
    %c0_i32 = arith.constant 0 : i32
    %c0_i32_0 = arith.constant 0 : i32
    %c0_i32_1 = arith.constant 0 : i32
    return %c0_i32, %c0_i32_0 : i32, i32
  }
  func.func @transform_7(%arg0: i32) -> (i32, i32) {
    %c0_i32 = arith.constant 0 : i32
    %c0_i32_0 = arith.constant 0 : i32
    %c0_i32_1 = arith.constant 0 : i32
    return %c0_i32, %c0_i32_0 : i32, i32
  }
  func.func @transform_8(%arg0: i32) -> (i32, i32) {
    %c0_i32 = arith.constant 0 : i32
    %c0_i32_0 = arith.constant 0 : i32
    %c0_i32_1 = arith.constant 0 : i32
    return %c0_i32, %c0_i32_0 : i32, i32
  }
  func.func @transform_9(%arg0: i32) -> (i32, i32) {
    %c0_i32 = arith.constant 0 : i32
    %c0_i32_0 = arith.constant 0 : i32
    return %arg0, %c0_i32 : i32, i32
  }
}

</mosaic_0001>

<bundles_post_ra>
// kernel: tpu_custom_call.1
= control target key start
LH: loop header
LB: loop body
LE: loop exit
PB: predicated region body
PF: predicated region fallthrough
CT: control target
= control target key end

     0   :  { %14 = vsyncpa [#allocation3], 0  ;;  %s1462_s0 = inlined_call_operand.hbm [shape: f32[8,32], index: 0, kind: input, shape index: {}]   ;;  %s1463_s1 = inlined_call_operand.hbm [shape: bf16[32,256], index: 1, kind: input, shape index: {}]   ;;  %s1464_s2 = inlined_call_operand.vmem [shape: f32[1,256], index: 2, kind: input, shape index: {}]   ;;  %s1465_s3 = inlined_call_operand.hbm [shape: bf16[256,256], index: 3, kind: input, shape index: {}]   ;;  %s1466_s4 = inlined_call_operand.hbm [shape: f32[1,256], index: 4, kind: input, shape index: {}]   ;;  %s1467_s5 = inlined_call_operand.hbm [shape: bf16[256,128], index: 5, kind: input, shape index: {}]   ;;  %s1468_s6 = inlined_call_operand.vmem [shape: f32[1,128], index: 6, kind: input, shape index: {}]   ;;  %s1469_s7 = inlined_call_operand.hbm [shape: bf16[128,512], index: 7, kind: input, shape index: {}]   ;;  %s1470_s8 = inlined_call_operand.vmem [shape: f32[1,512], index: 8, kind: input, shape index: {}]   ;;  %s1471_s9 = inlined_call_operand.hbm [shape: f32[8,512], index: 9, kind: output, shape index: {}]  }
   0x1   :  { %15 = vsyncpa [#allocation6], 0 }
   0x2   :  { %16 = vsyncpa [#allocation9], 0 }
   0x3   :  { %17 = vsyncpa [#allocation12], 0 }
   0x4   :  { %18 = vsyncpa [#allocation4], 0  ;;  %s1343_s30 = smov [#allocation5]  }
   0x5   :  { %s34_s10 = sshll.u32 %s1343_s30, 4  ;;  %s35_s10 = int_to_ptr.vmem [resolvable:$true] %s34_s10 }
   0x6   :  { %s1201_s11 = scalar_lea.vmem %s35_s10, 512  ;;  %p1206_p1 = scmp.lt.s32.totalorder %s35_s10, %s35_s10 }
   0x7   :  { %p1202_p0 = scmp.ne.s32.totalorder %s35_s10, %s1201_s11  ;;  %p1207_p2 = scmp.lt.s32.totalorder %s1201_s11, %s1201_s11 }
   0x9   :  { %p1208_p3 = por %p1207_p2, %p1206_p1 }
   0xb   :  { %p1209_p4 = pnand %p1208_p3, %p1202_p0 }
   0xd   :  { %1212 = shalt.err (!%p1209_p4)
}
   0xe   :  { %s1344_s12 = smov 128   ;;  %s1345_s13 = smov 8  }
   0xf   :  { %40 = dma.hbm_to_vmem [thread:$0]  %s1463_s1, 512, %s35_s10, [#allocation6], %s1344_s12, %s1344_s12, %s1345_s13  }
  0x10   :  { %s1346_s16 = smov [#allocation8]   ;;  %s1347_s18 = smov [#allocation2]  }
  0x11   :  { %s61_s17 = sshll.u32 %s1346_s16, 4  ;;  %s25_s19 = sshll.u32 %s1347_s18, 4  ;;  %s62_s17 = int_to_ptr.vmem [resolvable:$true] %s61_s17  ;;  %s26_s19 = int_to_ptr.vmem [resolvable:$true] %s25_s19 }
  0x12   :  { %s1221_s20 = scalar_lea.vmem %s62_s17, 32  ;;  %p1226_p6 = scmp.lt.s32.totalorder %s62_s17, %s62_s17 }
  0x13   :  { %p1222_p5 = scmp.ne.s32.totalorder %s62_s17, %s1221_s20  ;;  %p1227_p7 = scmp.lt.s32.totalorder %s1221_s20, %s1221_s20 }
  0x15   :  { %p1228_p8 = por %p1227_p7, %p1226_p6 }
  0x17   :  { %p1229_p9 = pnand %p1228_p8, %p1222_p5 }
  0x19   :  { %1232 = shalt.err (!%p1229_p9)
}
  0x1a   :  { %64 = dma.hbm_to_vmem [thread:$0]  %s1466_s4, 32, %s62_s17, [#allocation9]  }
  0x1b   :  { %s1241_s23 = scalar_lea.vmem %s26_s19, 128  ;;  %p1246_p11 = scmp.lt.s32.totalorder %s26_s19, %s26_s19 }
  0x1c   :  { %p1242_p10 = scmp.ne.s32.totalorder %s26_s19, %s1241_s23  ;;  %p1247_p12 = scmp.lt.s32.totalorder %s1241_s23, %s1241_s23 }
  0x1e   :  { %p1248_p13 = por %p1247_p12, %p1246_p11 }
  0x20   :  { %p1249_p0 = pnand %p1248_p13, %p1242_p10 }
  0x22   :  { %1252 = shalt.err (!%p1249_p0)
}
  0x23   :  { %28 = dma.hbm_to_vmem [thread:$0]  %s1462_s0, 128, %s26_s19, [#allocation3]  }
  0x24   :  { %s1348_s25 = smov [#allocation7]   ;;  %s1349_s27 = smov [#allocation10]  }
  0x25   :  { %s48_s26 = sshll.u32 %s1348_s25, 4  ;;  %s70_s28 = sshll.u32 %s1349_s27, 4  ;;  %s49_s26 = int_to_ptr.vmem [resolvable:$true] %s48_s26  ;;  %s71_s28 = int_to_ptr.vmem [resolvable:$true] %s70_s28 }
  0x26   :  { %s1261_s29 = scalar_lea.vmem %s49_s26, 4096  ;;  %p1266_p2 = scmp.lt.s32.totalorder %s49_s26, %s49_s26 }
  0x27   :  { %p1262_p1 = scmp.ne.s32.totalorder %s49_s26, %s1261_s29  ;;  %p1267_p3 = scmp.lt.s32.totalorder %s1261_s29, %s1261_s29 }
  0x29   :  { %p1268_p4 = por %p1267_p3, %p1266_p2 }
  0x2b   :  { %p1269_p5 = pnand %p1268_p4, %p1262_p1 }
  0x2d   :  { %1272 = shalt.err (!%p1269_p5)
}
  0x2e   :  { %54 = dma.hbm_to_vmem [thread:$0]  %s1465_s3, 4096, %s49_s26, [#allocation6], %s1344_s12, %s1344_s12, %s1345_s13  }
  0x2f   :  { %s1281_s0 = scalar_lea.vmem %s71_s28, 2048  ;;  %p1286_p7 = scmp.lt.s32.totalorder %s71_s28, %s71_s28 }
  0x30   :  { %p1282_p6 = scmp.ne.s32.totalorder %s71_s28, %s1281_s0  ;;  %p1287_p8 = scmp.lt.s32.totalorder %s1281_s0, %s1281_s0 }
  0x32   :  { %p1288_p9 = por %p1287_p8, %p1286_p7 }
  0x34   :  { %p1289_p10 = pnand %p1288_p9, %p1282_p6 }
  0x36   :  { %1292 = shalt.err (!%p1289_p10)
}
  0x37   :  { %s1350_s10 = smov 64   ;;  %s1351_s11 = smov 4  }
  0x38   :  { %76 = dma.hbm_to_vmem [thread:$0]  %s1467_s5, 2048, %s71_s28, [#allocation9], %s1350_s10, %s1350_s10, %s1351_s11  }
  0x39   :  { %s1352_s16 = smov [#allocation11]  }
  0x3a   :  { %s84_s17 = sshll.u32 %s1352_s16, 4  ;;  %s85_s17 = int_to_ptr.vmem [resolvable:$true] %s84_s17 }
  0x3b   :  { %s1301_s18 = scalar_lea.vmem %s85_s17, 4096  ;;  %p1306_p12 = scmp.lt.s32.totalorder %s85_s17, %s85_s17 }
  0x3c   :  { %p1302_p11 = scmp.ne.s32.totalorder %s85_s17, %s1301_s18  ;;  %p1307_p13 = scmp.lt.s32.totalorder %s1301_s18, %s1301_s18 }
  0x3e   :  { %p1308_p0 = por %p1307_p13, %p1306_p12 }
  0x40   :  { %p1309_p1 = pnand %p1308_p0, %p1302_p11 }
  0x42   :  { %1312 = shalt.err (!%p1309_p1)
}
  0x43   :  { %s1353_s3 = smov 256   ;;  %s1354_s12 = smov 16  }
  0x44   :  { %90 = dma.hbm_to_vmem [thread:$0]  %s1469_s7, 4096, %s85_s17, [#allocation12], %s1353_s3, %s1353_s3, %s1354_s12  }
  0x45   :  { %1333 = dma.done.wait [#allocation3], 128  }
  0x46   :  { %1334 = vsyncadd [#allocation3], 4294967168 }
  0x47   :  { %1335 = dma.done.wait [#allocation6], 4608  }
  0x48   :  { %1336 = vsyncadd [#allocation6], 4294962688 }
  0x49   :  { %1337 = dma.done.wait [#allocation9], 2080  }
  0x4a   :  { %1338 = vsyncadd [#allocation9], 4294965216 }
  0x4b   :  { %1339 = dma.done.wait [#allocation12], 4096  }
  0x4c   :  { %1340 = vsyncadd [#allocation12], 4294963200  ;;  %v1355_v0 = vmov 0   ;;  %v1075_v1 = vld [vmem:[#allocation5 + $0x14] ss:$8 sps:$4 sm:$0xff]   ;;  %vm150_vm0 = vcmask 261120   ;;  %v120_v50 = vlaneseq }
  0x4d   :  { %186 = vmatprep.mubr.bf16.mxu0 %v1355_v0  ;;  %v1077_v2 = vld [vmem:[#allocation5 + $0x10] ss:$8 sps:$4 sm:$0xff]   ;;  %166 = vmatprep.subr.bf16.mxu0 %v1075_v1  ;;  %v1078_v3 = vld [vmem:[#allocation5 + $0x4] ss:$8 sps:$4 sm:$0xff]   ;;  %v1080_v4 = vld [vmem:[#allocation5] ss:$8 sps:$4 sm:$0xff]  }
  0x4e   :  { %v112_v5 = vld [vmem:[#allocation2] sm:$0xff]  ;;  %167 = vmatpush1.bf16.msra.mxu0 %v1077_v2  ;;  %v1084_v8 = vld [vmem:[#allocation7 + $0x64] ss:$8 sps:$4 sm:$0xff]   ;;  %v1086_v10 = vld [vmem:[#allocation7 + $0x60] ss:$8 sps:$4 sm:$0xff]   ;;  %v1432_v51 = vshrl.u32 %v120_v50, 7 }
  0x4f   :  { %v1081_v6 = vld [vmem:[#allocation7 + $0x74] ss:$8 sps:$4 sm:$0xff]   ;;  %168 = vmatprep.subr.bf16.mxu0 %v1078_v3  ;;  %v1083_v7 = vld [vmem:[#allocation7 + $0x70] ss:$8 sps:$4 sm:$0xff]   ;;  %v113_v9 = vpack.c.bf16 %v112_v5, %v112_v5  ;;  %v1090_v13 = vld [vmem:[#allocation7 + $0x44] ss:$8 sps:$4 sm:$0xff]  }
  0x50   :  { %407 = vmatprep.subr.bf16.mxu1 %v1081_v6  ;;  %v1087_v11 = vld [vmem:[#allocation7 + $0x54] ss:$8 sps:$4 sm:$0xff]   ;;  %v1089_v12 = vld [vmem:[#allocation7 + $0x50] ss:$8 sps:$4 sm:$0xff]   ;;  %v1092_v14 = vld [vmem:[#allocation7 + $0x40] ss:$8 sps:$4 sm:$0xff]  }
  0x51   :  { %408 = vmatpush1.bf16.msra.mxu1 %v1083_v7  ;;  %v1093_v15 = vld [vmem:[#allocation7 + $0x34] ss:$8 sps:$4 sm:$0xff]   ;;  %v1095_v16 = vld [vmem:[#allocation7 + $0x30] ss:$8 sps:$4 sm:$0xff]   ;;  %v1096_v17 = vld [vmem:[#allocation7 + $0x24] ss:$8 sps:$4 sm:$0xff]  }
  0x52   :  { %169 = vmatpush1.bf16.msra.mxu0 %v1080_v4  ;;  %409 = vmatprep.subr.bf16.mxu1 %v1084_v8  ;;  %v1098_v18 = vld [vmem:[#allocation7 + $0x20] ss:$8 sps:$4 sm:$0xff]   ;;  %v1099_v19 = vld [vmem:[#allocation7 + $0x14] ss:$8 sps:$4 sm:$0xff]   ;;  %v1101_v20 = vld [vmem:[#allocation7 + $0x10] ss:$8 sps:$4 sm:$0xff]  }
  0x53   :  { %v1102_v21 = vld [vmem:[#allocation7 + $0x4] ss:$8 sps:$4 sm:$0xff]   ;;  %v1104_v22 = vld [vmem:[#allocation7] ss:$8 sps:$4 sm:$0xff]   ;;  %v1105_v23 = vld [vmem:[#allocation7 + $0xf4] ss:$8 sps:$4 sm:$0xff]  }
  0x54   :  { %v1107_v24 = vld [vmem:[#allocation7 + $0xf0] ss:$8 sps:$4 sm:$0xff]   ;;  %v1108_v25 = vld [vmem:[#allocation7 + $0xe4] ss:$8 sps:$4 sm:$0xff]   ;;  %v1110_v26 = vld [vmem:[#allocation7 + $0xe0] ss:$8 sps:$4 sm:$0xff]  }
  0x55   :  { %957 = vmatmul.mubr.msk.bf16.vlgmr.msra.gmra.mxu0 %vm150_vm0, %v113_v9  ;;  %410 = vmatpush1.bf16.msra.mxu1 %v1086_v10  ;;  %v1111_v27 = vld [vmem:[#allocation7 + $0xd4] ss:$8 sps:$4 sm:$0xff]   ;;  %v1113_v28 = vld [vmem:[#allocation7 + $0xd0] ss:$8 sps:$4 sm:$0xff]   ;;  %v1114_v29 = vld [vmem:[#allocation7 + $0xc4] ss:$8 sps:$4 sm:$0xff]  }
  0x56   :  { %411 = vmatprep.subr.bf16.mxu1 %v1087_v11  ;;  %v1116_v30 = vld [vmem:[#allocation7 + $0xc0] ss:$8 sps:$4 sm:$0xff]   ;;  %v1117_v31 = vld [vmem:[#allocation7 + $0xb4] ss:$8 sps:$4 sm:$0xff]   ;;  %v1119_v32 = vld [vmem:[#allocation7 + $0xb0] ss:$8 sps:$4 sm:$0xff]  }
  0x57   :  { %v1120_v33 = vld [vmem:[#allocation7 + $0xa4] ss:$8 sps:$4 sm:$0xff]   ;;  %v1122_v34 = vld [vmem:[#allocation7 + $0xa0] ss:$8 sps:$4 sm:$0xff]   ;;  %v1123_v35 = vld [vmem:[#allocation7 + $0x94] ss:$8 sps:$4 sm:$0xff]  }
  0x58   :  { %v1125_v36 = vld [vmem:[#allocation7 + $0x90] ss:$8 sps:$4 sm:$0xff]   ;;  %v1126_v37 = vld [vmem:[#allocation7 + $0x84] ss:$8 sps:$4 sm:$0xff]   ;;  %v1128_v38 = vld [vmem:[#allocation7 + $0x80] ss:$8 sps:$4 sm:$0xff]  }
  0x59   :  { %412 = vmatpush1.bf16.msra.mxu1 %v1089_v12  ;;  %v1129_v39 = vld [vmem:[#allocation10 + $0x78] sm:$0xff]   ;;  %v1131_v41 = vld [vmem:[#allocation10 + $0x70] sm:$0xff]   ;;  %v1133_v43 = vld [vmem:[#allocation10 + $0x68] sm:$0xff]   ;;  %v1435_v52 = vsub.s32 0, %v1432_v51  ;;  %v1441_v54 = vsub.s32 1, %v1432_v51 }
  0x5a   :  { %413 = vmatprep.subr.bf16.mxu1 %v1090_v13  ;;  %v1130_v40 = vld [vmem:[#allocation10 + $0x38] sm:$0xff]   ;;  %1039 = vmatprep.subr.bf16.mxu0 %v1129_v39  ;;  %v1132_v42 = vld [vmem:[#allocation10 + $0x30] sm:$0xff]   ;;  %v1134_v44 = vld [vmem:[#allocation10 + $0x28] sm:$0xff]  }
  0x5b   :  { %1040 = vmatpush3.bf16.msra.mxu0 %v1130_v40  ;;  %v1135_v45 = vld [vmem:[#allocation10 + $0x60] sm:$0xff]   ;;  %v1137_v47 = vld [vmem:[#allocation10 + $0x58] sm:$0xff]   ;;  %v1139_v49 = vld [vmem:[#allocation10 + $0x50] sm:$0xff]  }
  0x5c   :  { %1041 = vmatprep.subr.bf16.mxu0 %v1131_v41  ;;  %v1136_v46 = vld [vmem:[#allocation10 + $0x20] sm:$0xff]   ;;  %v1138_v48 = vld [vmem:[#allocation10 + $0x18] sm:$0xff]   ;;  %v118_v53 = vld [vmem:[%s1464_s2] sm:$0x3] }
  0x5d   :  { %414 = vmatpush1.bf16.msra.mxu1 %v1092_v14  ;;  %v123_v55 = vrot.slane %v118_v53, %v1435_v52  ;;  %v127_v56 = vrot.slane %v118_v53, %v1441_v54  ;;  %v1140_v6 = vld [vmem:[#allocation10 + $0x10] sm:$0xff]   ;;  %v1141_v7 = vld [vmem:[#allocation10 + $0x48] sm:$0xff]   ;;  %v1143_v9 = vld [vmem:[#allocation10 + $0x40] sm:$0xff]  }
  0x5e   :  { %415 = vmatprep.subr.bf16.mxu1 %v1093_v15  ;;  %v1142_v8 = vld [vmem:[#allocation10 + $0x8] sm:$0xff]   ;;  %v1144_v10 = vld [vmem:[#allocation10] sm:$0xff]  }
  0x5f   :  { %1042 = vmatpush3.bf16.msra.mxu0 %v1132_v42  ;;  %v1147_v11 = vld [vmem:[#allocation11 + $0xe4] ss:$16 sps:$4 sm:$0xff]   ;;  %v1148_v12 = vld [vmem:[#allocation11 + $0xe8] ss:$16 sps:$4 sm:$0xff]   ;;  %v1150_v13 = vld [vmem:[#allocation11 + $0xec] ss:$16 sps:$4 sm:$0xff]  }
  0x60   :  { %1043 = vmatprep.subr.bf16.mxu0 %v1133_v43  ;;  %v1156_v14 = vld [vmem:[#allocation11 + $0xcc] ss:$16 sps:$4 sm:$0xff]   ;;  %v1154_v15 = vld [vmem:[#allocation11 + $0xc8] ss:$16 sps:$4 sm:$0xff]   ;;  %v1151_v39 = vld [vmem:[#allocation11 + $0xc0] ss:$16 sps:$4 sm:$0xff]  }
  0x61   :  { %416 = vmatpush1.bf16.msra.mxu1 %v1095_v16  ;;  %v1162_v16 = vld [vmem:[#allocation11 + $0xac] ss:$16 sps:$4 sm:$0xff]   ;;  %v1159_v40 = vld [vmem:[#allocation11 + $0xa4] ss:$16 sps:$4 sm:$0xff]   ;;  %v1157_v41 = vld [vmem:[#allocation11 + $0xa0] ss:$16 sps:$4 sm:$0xff]  }
  0x62   :  { %417 = vmatprep.subr.bf16.mxu1 %v1096_v17  ;;  %v1160_v17 = vld [vmem:[#allocation11 + $0xa8] ss:$16 sps:$4 sm:$0xff]   ;;  %v1165_v42 = vld [vmem:[#allocation11 + $0x84] ss:$16 sps:$4 sm:$0xff]   ;;  %v1163_v43 = vld [vmem:[#allocation11 + $0x80] ss:$16 sps:$4 sm:$0xff]  }
  0x63   :  { %1044 = vmatpush3.bf16.msra.mxu0 %v1134_v44  ;;  %v1171_v44 = vld [vmem:[#allocation11 + $0x64] ss:$16 sps:$4 sm:$0xff]   ;;  %v1186_v50 = vld [vmem:[#allocation11 + $0x2c] ss:$16 sps:$4 sm:$0xff]   ;;  %v1181_v53 = vld [vmem:[#allocation11 + $0x20] ss:$16 sps:$4 sm:$0xff]  }
  0x64   :  { %1045 = vmatprep.subr.bf16.mxu0 %v1135_v45  ;;  %v1169_v45 = vld [vmem:[#allocation11 + $0x60] ss:$16 sps:$4 sm:$0xff]  }
  0x65   :  { %418 = vmatpush1.bf16.msra.mxu1 %v1098_v18  ;;  %v1168_v18 = vld [vmem:[#allocation11 + $0x8c] ss:$16 sps:$4 sm:$0xff]  }
  0x66   :  { %419 = vmatprep.subr.bf16.mxu1 %v1099_v19  ;;  %v1166_v19 = vld [vmem:[#allocation11 + $0x88] ss:$16 sps:$4 sm:$0xff]  }
  0x67   :  { %1046 = vmatpush3.bf16.msra.mxu0 %v1136_v46  ;;  %v1177_v46 = vld [vmem:[#allocation11 + $0x44] ss:$16 sps:$4 sm:$0xff]  }
  0x68   :  { %1047 = vmatprep.subr.bf16.mxu0 %v1137_v47  ;;  %v1180_v47 = vld [vmem:[#allocation11 + $0x4c] ss:$16 sps:$4 sm:$0xff]  }
  0x69   :  { %420 = vmatpush1.bf16.msra.mxu1 %v1101_v20  ;;  %v1174_v20 = vld [vmem:[#allocation11 + $0x6c] ss:$16 sps:$4 sm:$0xff]  }
  0x6a   :  { %421 = vmatprep.subr.bf16.mxu1 %v1102_v21  ;;  %v1172_v21 = vld [vmem:[#allocation11 + $0x68] ss:$16 sps:$4 sm:$0xff]  }
  0x6b   :  { %1048 = vmatpush3.bf16.msra.mxu0 %v1138_v48  ;;  %v1175_v48 = vld [vmem:[#allocation11 + $0x40] ss:$16 sps:$4 sm:$0xff]  }
  0x6c   :  { %1049 = vmatprep.subr.bf16.mxu0 %v1139_v49  ;;  %v1178_v49 = vld [vmem:[#allocation11 + $0x48] ss:$16 sps:$4 sm:$0xff]  }
  0x6d   :  { %422 = vmatpush1.bf16.msra.mxu1 %v1104_v22  ;;  %v235_v22 = vld [vmem:[#allocation8] sm:$0x3] }
  0x6e   :  { %423 = vmatprep.subr.bf16.mxu1 %v1105_v23  ;;  %v240_v23 = vrot.slane %v235_v22, %v1435_v52 }
  0x6f   :  { %1050 = vmatpush3.bf16.msra.mxu0 %v1140_v6 }
  0x70   :  { %1051 = vmatprep.subr.bf16.mxu0 %v1141_v7  ;;  %v679_v7 = vsub.s32 2, %v1432_v51 }
  0x71   :  { %424 = vmatpush2.bf16.msra.mxu1 %v1107_v24  ;;  %v244_v24 = vrot.slane %v235_v22, %v1441_v54 }
  0x72   :  { %425 = vmatprep.subr.bf16.mxu1 %v1108_v25 }
  0x73   :  { %1052 = vmatpush3.bf16.msra.mxu0 %v1142_v8  ;;  %v667_v8 = vld [vmem:[%s1470_s8] sm:$0xf] }
  0x74   :  { %1053 = vmatprep.subr.bf16.mxu0 %v1143_v9  ;;  %v683_v9 = vsub.s32 3, %v1432_v51 }
  0x75   :  { %426 = vmatpush2.bf16.msra.mxu1 %v1110_v26 }
  0x76   :  { %427 = vmatprep.subr.bf16.mxu1 %v1111_v27 }
  0x77   :  { %1054 = vmatpush3.bf16.msra.mxu0 %v1144_v10  ;;  %v672_v10 = vrot.slane %v667_v8, %v1435_v52 }
  0x78   :  { %849 = vmatprep.subr.bf16.mxu0 %v1147_v11  ;;  %v680_v11 = vrot.slane %v667_v8, %v679_v7 }
  0x79   :  { %428 = vmatpush2.bf16.msra.mxu1 %v1113_v28 }
  0x7a   :  { %429 = vmatprep.subr.bf16.mxu1 %v1114_v29 }
  0x7d   :  { %430 = vmatpush2.bf16.msra.mxu1 %v1116_v30 }
  0x7e   :  { %431 = vmatprep.subr.bf16.mxu1 %v1117_v31 }
  0x81   :  { %432 = vmatpush2.bf16.msra.mxu1 %v1119_v32 }
  0x82   :  { %433 = vmatprep.subr.bf16.mxu1 %v1120_v33 }
  0x85   :  { %434 = vmatpush2.bf16.msra.mxu1 %v1122_v34 }
  0x86   :  { %435 = vmatprep.subr.bf16.mxu1 %v1123_v35 }
  0x89   :  { %436 = vmatpush2.bf16.msra.mxu1 %v1125_v36  ;;  %v1145_v36 = vld [vmem:[#allocation11 + $0xe0] ss:$16 sps:$4 sm:$0xff]  }
  0x8a   :  { %437 = vmatprep.subr.bf16.mxu1 %v1126_v37 }
  0x8d   :  { %438 = vmatpush2.bf16.msra.mxu1 %v1128_v38  ;;  %v1153_v38 = vld [vmem:[#allocation11 + $0xc4] ss:$16 sps:$4 sm:$0xff]  }
  0x8e   :  { %890 = vmatprep.subr.bf16.mxu1 %v1150_v13  ;;  %v684_v13 = vrot.slane %v667_v8, %v683_v9 }
 0x115   :  { %v188_v57 = vpop.f32.mrf.mxu0 }
 0x116   :  { %v189_v58 = vadd.f32 %v188_v57, %v123_v55  ;;  %v1184_v55 = vld [vmem:[#allocation11 + $0x28] ss:$16 sps:$4 sm:$0xff]   ;;  %v1192_v57 = vld [vmem:[#allocation11 + $0xc] ss:$16 sps:$4 sm:$0xff]  }
 0x117   :  { %v190_v59 = vpop.f32.mrf.mxu0 }
 0x118   :  { %vm195_vm1 = vcmp.gt.f32.partialorder %v189_v58, 0.0  ;;  %v197_v60 = vmul.f32 0.1, %v189_v58  ;;  %v191_v61 = vadd.f32 %v190_v59, %v127_v56  ;;  %v1189_v56 = vld [vmem:[#allocation11 + $0x4] ss:$16 sps:$4 sm:$0xff]  }
 0x119   :  { %v192_v62 = vpop.f32.mrf.mxu0  ;;  %v1190_v59 = vld [vmem:[#allocation11 + $0x8] ss:$16 sps:$4 sm:$0xff]  }
 0x11a   :  { %vm196_vm2 = vcmp.gt.f32.partialorder %v191_v61, 0.0  ;;  %v198_v63 = vmul.f32 0.1, %v191_v61  ;;  %v199_v2 = vsel %vm195_vm1, %v189_v58, %v197_v60  ;;  %v1187_v58 = vld [vmem:[#allocation11] ss:$16 sps:$4 sm:$0xff]  }
 0x11b   :  { %v193_v1 = vpop.f32.mrf.mxu0  ;;  %v201_v5 = vpack.c.bf16 %v199_v2, %v199_v2 }
 0x11c   :  { %v200_v3 = vsel %vm196_vm2, %v191_v61, %v198_v63  ;;  %v990_v61 = vld [vmem:[%s1468_s6] ss:$0 sm:$0xff]  ;;  %s1356_s6 = smov [#allocation13]  }
 0x11d   :  { %v202_v4 = vpack.c.bf16 %v200_v3, %v200_v3  ;;  %s941_s23 = sshll.u32 %s1356_s6, 4  ;;  %s942_s23 = int_to_ptr.vmem [resolvable:$true] %s941_s23 }
 0x11e   :  { %s1313_s8 = scalar_lea.vmem %s942_s23, 512  ;;  %p1318_p3 = scmp.lt.s32.totalorder %s942_s23, %s942_s23 }
 0x11f   :  { %439 = vmatprep.mubr.bf16.mxu1 %v202_v4  ;;  %p1314_p2 = scmp.ne.s32.totalorder %s942_s23, %s1313_s8  ;;  %p1319_p4 = scmp.lt.s32.totalorder %s1313_s8, %s1313_s8 }
 0x120   :  { %440 = vmatmul.mubr.bf16.vlgmr.msra.gmra.mxu1 %v201_v5 }
 0x121   :  { %922 = vmatprep.mubr.bf16.mxu1 %v1355_v0  ;;  %891 = vmatpush1.bf16.msra.mxu1 %v1148_v12  ;;  %v676_v12 = vrot.slane %v667_v8, %v1441_v54  ;;  %p1320_p5 = por %p1319_p4, %p1318_p3 }
 0x122   :  { %892 = vmatprep.subr.bf16.mxu1 %v1156_v14 }
 0x123   :  { %p1321_p6 = pnand %p1320_p5, %p1314_p2 }
 0x125   :  { %893 = vmatpush1.bf16.msra.mxu1 %v1154_v15 }
 0x126   :  { %894 = vmatprep.subr.bf16.mxu1 %v1162_v16 }
 0x129   :  { %895 = vmatpush1.bf16.msra.mxu1 %v1160_v17 }
 0x12a   :  { %896 = vmatprep.subr.bf16.mxu1 %v1168_v18 }
 0x12d   :  { %897 = vmatpush1.bf16.msra.mxu1 %v1166_v19 }
 0x12e   :  { %898 = vmatprep.subr.bf16.mxu1 %v1174_v20 }
 0x131   :  { %899 = vmatpush1.bf16.msra.mxu1 %v1172_v21 }
 0x132   :  { %900 = vmatprep.subr.bf16.mxu1 %v1180_v47 }
 0x135   :  { %901 = vmatpush1.bf16.msra.mxu1 %v1178_v49 }
 0x136   :  { %902 = vmatprep.subr.bf16.mxu1 %v1186_v50 }
 0x139   :  { %903 = vmatpush1.bf16.msra.mxu1 %v1184_v55 }
 0x13a   :  { %904 = vmatprep.subr.bf16.mxu1 %v1192_v57 }
 0x13d   :  { %905 = vmatpush1.bf16.msra.mxu1 %v1190_v59 }
 0x1e0   :  { %v441_v25 = vpop.f32.mrf.mxu1 }
 0x1e1   :  { %v442_v26 = vadd.f32 %v441_v25, %v240_v23 }
 0x1e2   :  { %v443_v27 = vpop.f32.mrf.mxu1 }
 0x1e3   :  { %vm448_vm3 = vcmp.gt.f32.partialorder %v442_v26, 0.0  ;;  %v450_v28 = vmul.f32 0.1, %v442_v26  ;;  %v444_v29 = vadd.f32 %v443_v27, %v244_v24 }
 0x1e4   :  { %v445_v30 = vpop.f32.mrf.mxu1 }
 0x1e5   :  { %vm449_vm4 = vcmp.gt.f32.partialorder %v444_v29, 0.0  ;;  %v451_v31 = vmul.f32 0.1, %v444_v29  ;;  %v452_v32 = vsel %vm448_vm3, %v442_v26, %v450_v28 }
 0x1e6   :  { %v446_v33 = vpop.f32.mrf.mxu1  ;;  %v454_v37 = vpack.c.bf16 %v452_v32, %v452_v32 }
 0x1e7   :  { %v453_v34 = vsel %vm449_vm4, %v444_v29, %v451_v31 }
 0x1e8   :  { %v455_v35 = vpack.c.bf16 %v453_v34, %v453_v34 }
 0x1ea   :  { %623 = vmatprep.mubr.bf16.mxu0 %v455_v35 }
 0x1eb   :  { %624 = vmatmul.mubr.bf16.vlgmr.msra.gmra.mxu0 %v454_v37 }
 0x1ec   :  { %850 = vmatpush1.bf16.msra.mxu0 %v1145_v36  ;;  %881 = vmatprep.mubr.bf16.mxu0 %v1355_v0  ;;  %v1183_v0 = vld [vmem:[#allocation11 + $0x24] ss:$16 sps:$4 sm:$0xff]  }
 0x1ed   :  { %851 = vmatprep.subr.bf16.mxu0 %v1153_v38 }
 0x1f0   :  { %852 = vmatpush1.bf16.msra.mxu0 %v1151_v39 }
 0x1f1   :  { %853 = vmatprep.subr.bf16.mxu0 %v1159_v40 }
 0x1f4   :  { %854 = vmatpush1.bf16.msra.mxu0 %v1157_v41 }
 0x1f5   :  { %855 = vmatprep.subr.bf16.mxu0 %v1165_v42 }
 0x1f8   :  { %856 = vmatpush1.bf16.msra.mxu0 %v1163_v43 }
 0x1f9   :  { %857 = vmatprep.subr.bf16.mxu0 %v1171_v44 }
 0x1fc   :  { %858 = vmatpush1.bf16.msra.mxu0 %v1169_v45 }
 0x1fd   :  { %859 = vmatprep.subr.bf16.mxu0 %v1177_v46 }
 0x200   :  { %860 = vmatpush1.bf16.msra.mxu0 %v1175_v48 }
 0x201   :  { %861 = vmatprep.subr.bf16.mxu0 %v1183_v0 }
 0x204   :  { %862 = vmatpush1.bf16.msra.mxu0 %v1181_v53 }
 0x205   :  { %863 = vmatprep.subr.bf16.mxu0 %v1189_v56 }
 0x208   :  { %864 = vmatpush1.bf16.msra.mxu0 %v1187_v58 }
 0x2ab   :  { %v1055_v60 = vpop.f32.mrf.mxu0 }
 0x2ad   :  { %v1056_v62 = vpop.f32.mrf.mxu0 }
 0x2ae   :  { %v1057_v63 = vadd.f32 %v1056_v62, %v1055_v60 }
 0x2af   :  { %v1058_v1 = vpop.f32.mrf.mxu0 }
 0x2b0   :  { %v626_v2 = vadd.f32 %v1057_v63, %v990_v61 }
 0x2b1   :  { %v1059_v3 = vpop.f32.mrf.mxu0 }
 0x2b2   :  { %vm631_vm5 = vcmp.gt.f32.partialorder %v626_v2, 0.0  ;;  %v632_v4 = vmul.f32 0.1, %v626_v2 }
 0x2b4   :  { %v633_v5 = vsel %vm631_vm5, %v626_v2, %v632_v4 }
 0x2b5   :  { %v634_v6 = vpack.c.bf16 %v633_v5, %v633_v5 }
 0x2b7   :  { %882 = vmatmul.mubr.bf16.vlgmr.msra.gmra.mxu0 %v634_v6  ;;  %923 = vmatmul.mubr.bf16.vlgmr.msra.gmra.mxu1 %v634_v6 }
 0x377   :  { %v883_v14 = vpop.f32.mrf.mxu0  ;;  %v924_v15 = vpop.f32.mrf.mxu1 }
 0x378   :  { %v884_v16 = vadd.f32 %v883_v14, %v672_v10  ;;  %v925_v17 = vadd.f32 %v924_v15, %v680_v11 }
 0x379   :  { %v885_v18 = vpop.f32.mrf.mxu0  ;;  %v926_v19 = vpop.f32.mrf.mxu1 }
 0x37a   :  { %931 = vst [vmem:[#allocation13] sm:$0xff] %v884_v16  ;;  %933 = vst [vmem:[#allocation13 + $0x10] sm:$0xff] %v925_v17  ;;  %v886_v20 = vadd.f32 %v885_v18, %v676_v12  ;;  %v927_v21 = vadd.f32 %v926_v19, %v684_v13 }
 0x37b   :  { %v887_v51 = vpop.f32.mrf.mxu0  ;;  %v928_v22 = vpop.f32.mrf.mxu1 }
 0x37c   :  { %932 = vst [vmem:[#allocation13 + $0x8] sm:$0xff] %v886_v20  ;;  %934 = vst [vmem:[#allocation13 + $0x18] sm:$0xff] %v927_v21 }
 0x37d   :  { %v888_v52 = vpop.f32.mrf.mxu0  ;;  %v929_v54 = vpop.f32.mrf.mxu1 }
 0x37e   :  { %1324 = shalt.err (!%p1321_p6)
}
 0x37f   :  { %944 = dma.vmem_to_hbm [thread:$0]  %s942_s23, 512, %s1471_s9, [#allocation4]  }
 0x380   :  { %1341 = dma.done.wait [#allocation4], 512  }
 0x381   :  { %1342 = vsyncadd [#allocation4], 4294966784 }
 0x382   :  { %948 = vsyncpa [#allocation3], 1 }
 0x383   :  { %949 = vsyncpa [#allocation6], 1 }
 0x384   :  { %950 = vsyncpa [#allocation9], 1 }
 0x385   :  { %951 = vsyncpa [#allocation12], 1 }
 0x386   :  { %952 = vsyncpa [#allocation4], 1 }

</bundles_post_ra>
